<compile_context>
chip_gen: v6e
topology: v6e:2x2x1
jax: 0.10.0
libtpu: 0.0.40
codegen_flags: <defaults>
</compile_context>

<pallas_src>
import jax
import jax.numpy as jnp
from jax.experimental import pallas as pl
from jax.experimental.pallas import tpu as pltpu


def _round_up(v, m):
    return ((v + m - 1) // m) * m


def _make_kernel(tile_b, chunk):
    n_chunks = tile_b // chunk
    slab_rows = chunk // 64          # output-slab rows produced per sub-chunk

    def mlp_kernel(x_ref, w1_ref, b1_ref, w2_ref, b2_ref, w3t_ref, b3s_ref, o_ref):
        # Resident operands: loaded once per grid step (constant index_map).
        w1 = w1_ref[...]             # (6, 128)   f32
        b1 = b1_ref[...]             # (1, 128)   f32
        w2 = w2_ref[...]             # (128, 128) bf16
        b2 = b2_ref[...]             # (1, 128)   f32
        w3c0 = w3t_ref[0:1, :]       # (1, 128)   f32   fc3 column 0
        w3c1 = w3t_ref[1:2, :]       # (1, 128)   f32   fc3 column 1
        b3s = b3s_ref[...]           # (1, 128)   f32   lane-dense fc3 bias slab

        # Static sub-chunk loop: bounds live ranges of the (chunk, 128) intermediates.
        for c in range(n_chunks):
            r0 = c * chunk
            x = x_ref[pl.ds(r0, chunk), :]                      # (chunk, 6) f32

            # fc1 (6 -> 128) on the VPU in f32: K=6 broadcast multiply-adds (no MXU).
            h1 = x[:, 0:1] * w1[0:1, :]
            for k in range(1, 6):
                h1 = h1 + x[:, k:k + 1] * w1[k:k + 1, :]
            h1 = jnp.maximum(h1 + b1, 0.0)                      # (chunk, 128) f32

            # fc2 (128 -> 128): the only matmul worth MXU pushes (bf16 in, f32 acc).
            h2 = jnp.dot(h1.astype(jnp.bfloat16), w2,
                         preferred_element_type=jnp.float32)
            h2 = jnp.maximum(h2 + b2, 0.0)                      # (chunk, 128) f32

            # fc3 (128 -> 2) on VPU + XLU lane reductions, assembled lane-dense:
            #   slab[r, 0:64]   = output column 0 of rows [64r, 64r+64)
            #   slab[r, 64:128] = output column 1 of the same rows.
            h2r = h2.reshape(slab_rows, 64, 128)
            o0 = jnp.sum(h2r * w3c0, axis=-1)                   # (slab_rows, 64)
            o1 = jnp.sum(h2r * w3c1, axis=-1)                   # (slab_rows, 64)
            slab = jnp.concatenate([o0, o1], axis=-1) + b3s     # (slab_rows, 128)
            o_ref[pl.ds(c * slab_rows, slab_rows), :] = slab

    return mlp_kernel


def net_forward(x, params, *, tile_b=2048):
    """x: (B, 6) float32 -> (B, 2) float32."""
    w1, b1, w2, b2, w3, b3 = params
    B = x.shape[0]

    # --- batch-tile selection -------------------------------------------------
    # Small B: a single tile whose output-slab block equals the full array (so any
    # multiple of 64 rows is legal).  Larger B: tiles are multiples of 512 rows so the
    # (TILE_B//64, 128) output blocks stay (8,128)-aligned, and we aim for >=2 grid
    # steps so v7x's two TensorCores both get a share of the "parallel" batch axis.
    if B <= 512:
        TILE_B = _round_up(max(B, 1), 64)
    else:
        TILE_B = min(_round_up(tile_b, 512), _round_up(pl.cdiv(B, 2), 512))
    # In-kernel sub-chunk: largest of {512, 256, 128, 64} dividing TILE_B.
    CHUNK = 512
    while TILE_B % CHUNK:
        CHUNK //= 2

    num_tiles = pl.cdiv(B, TILE_B)
    B_pad = num_tiles * TILE_B
    if B_pad != B:
        x = jnp.pad(x, ((0, B_pad - B), (0, 0)))
    x = x.astype(jnp.float32)   # fc1 stays exact in f32 (only fc2 operands go bf16)

    w1_f = w1.astype(jnp.float32)                      # (6, 128)
    b1_2d = b1.reshape(1, -1).astype(jnp.float32)      # (1, 128)
    w2_bf = w2.astype(jnp.bfloat16)                    # (128, 128)
    b2_2d = b2.reshape(1, -1).astype(jnp.float32)      # (1, 128)
    w3_t = jnp.transpose(w3).astype(jnp.float32)       # (2, 128)
    # Lane-dense fc3 bias slab: lanes 0:64 = b3[0], lanes 64:128 = b3[1].
    b3_slab = jnp.repeat(b3.astype(jnp.float32), 64).reshape(1, 128)

    const = lambda i: (0, 0)   # resident weights/biases: same block every grid step

    kernel = _make_kernel(TILE_B, CHUNK)
    slab = pl.pallas_call(
        kernel,
        out_shape=jax.ShapeDtypeStruct((B_pad // 64, 128), jnp.float32),
        grid_spec=pltpu.PrefetchScalarGridSpec(
            num_scalar_prefetch=0,
            grid=(num_tiles,),
            in_specs=[
                pl.BlockSpec((TILE_B, 6), lambda i: (i, 0)),    # x tile (pipelined)
                pl.BlockSpec((6, 128), const),                  # w1 (resident)
                pl.BlockSpec((1, 128), const),                  # b1
                pl.BlockSpec((128, 128), const),                # w2
                pl.BlockSpec((1, 128), const),                  # b2
                pl.BlockSpec((2, 128), const),                  # w3^T
                pl.BlockSpec((1, 128), const),                  # b3 slab
            ],
            out_specs=pl.BlockSpec((TILE_B // 64, 128), lambda i: (i, 0)),
        ),
        compiler_params=pltpu.CompilerParams(
            dimension_semantics=("parallel",),    # megacore-shardable batch axis
            vmem_limit_bytes=32 * 1024 * 1024,    # explicit headroom (v5e default = 16 MiB)
        ),
    )(x, w1_f, b1_2d, w2_bf, b2_2d, w3_t, b3_slab)

    # Reassemble (B, 2) from the lane-dense slab (cheap XLA reshapes on tiny data).
    col0 = slab[:, :64].reshape(-1)
    col1 = slab[:, 64:].reshape(-1)
    out = jnp.stack([col0, col1], axis=-1)
    return out[:B]


def init_params(key):
    """Deterministic init mimicking nn.Linear's U(-1/sqrt(fan_in), 1/sqrt(fan_in)).
    Weights stored as (in_features, out_features)."""
    def linear(key, fan_in, fan_out):
        kw, kb = jax.random.split(key)
        bound = 1.0 / jnp.sqrt(fan_in)
        w = jax.random.uniform(kw, (fan_in, fan_out), jnp.float32, -bound, bound)
        b = jax.random.uniform(kb, (fan_out,), jnp.float32, -bound, bound)
        return w, b

    k1, k2, k3 = jax.random.split(key, 3)
    w1, b1 = linear(k1, 6, 128)
    w2, b2 = linear(k2, 128, 128)
    w3, b3 = linear(k3, 128, 2)
    return (w1, b1, w2, b2, w3, b3)


def reference_forward(x, params):
    w1, b1, w2, b2, w3, b3 = params
    h = jnp.maximum(x @ w1 + b1, 0.0)
    h = jnp.maximum(h @ w2 + b2, 0.0)
    return h @ w3 + b3


if __name__ == "__main__":
    key = jax.random.PRNGKey(0)
    kp, kx = jax.random.split(key)
    params = init_params(kp)

    # B=8 exercises the tiny single-tile path; B=600 exercises two "parallel" grid
    # steps (512-row tiles), batch padding, and the aligned 512-row sub-chunk path.
    for B in (8, 600):
        xb = jax.random.normal(jax.random.fold_in(kx, B), (B, 6), jnp.float32)
        out = jax.block_until_ready(net_forward(xb, params))
        ref = reference_forward(xb, params)
        assert out.shape == (B, 2), out.shape
        # only fc2 uses bf16 operands -> tolerance looser than pure-f32 reference
        assert jnp.allclose(out, ref, atol=2e-2, rtol=2e-2), f"mismatch vs reference (B={B})"
    print("KERNEL_OK")
</pallas_src>

<mosaic_0001>
module attributes {stable_mosaic.version = 11 : i64} {
  func.func @mlp_kernel(%arg0: i32, %arg1: memref<64x6xf32, #tpu.memory_space<vmem>>, %arg2: memref<6x128xf32, #tpu.memory_space<vmem>>, %arg3: memref<1x128xf32, #tpu.memory_space<vmem>>, %arg4: memref<128x128xbf16, #tpu.memory_space<vmem>>, %arg5: memref<1x128xf32, #tpu.memory_space<vmem>>, %arg6: memref<2x128xf32, #tpu.memory_space<vmem>>, %arg7: memref<1x128xf32, #tpu.memory_space<vmem>>, %arg8: memref<1x128xf32, #tpu.memory_space<vmem>>) attributes {dimension_semantics = [#tpu.dimension_semantics<parallel>], iteration_bounds = array<i64: 1>, scalar_prefetch = 0 : i64, scratch_operands = 0 : i64, tpu.core_type = #tpu.core_type<tc>, window_params = [{transform_indices = @transform_0, window_bounds = array<i64: 64, 6>}, {pipeline_mode = #tpu.pipeline_mode<synchronous>, transform_indices = @transform_1, window_bounds = array<i64: 6, 128>}, {pipeline_mode = #tpu.pipeline_mode<synchronous>, transform_indices = @transform_2, window_bounds = array<i64: 1, 128>}, {pipeline_mode = #tpu.pipeline_mode<synchronous>, transform_indices = @transform_3, window_bounds = array<i64: 128, 128>}, {pipeline_mode = #tpu.pipeline_mode<synchronous>, transform_indices = @transform_4, window_bounds = array<i64: 1, 128>}, {pipeline_mode = #tpu.pipeline_mode<synchronous>, transform_indices = @transform_5, window_bounds = array<i64: 2, 128>}, {pipeline_mode = #tpu.pipeline_mode<synchronous>, transform_indices = @transform_6, window_bounds = array<i64: 1, 128>}, {transform_indices = @transform_7, window_bounds = array<i64: 1, 128>}]} {
    %c0 = arith.constant 0 : index
    %c0_0 = arith.constant 0 : index
    %0 = vector.load %arg2[%c0, %c0_0] : memref<6x128xf32, #tpu.memory_space<vmem>>, vector<6x128xf32>
    %c0_1 = arith.constant 0 : index
    %c0_2 = arith.constant 0 : index
    %1 = vector.load %arg3[%c0_1, %c0_2] : memref<1x128xf32, #tpu.memory_space<vmem>>, vector<1x128xf32>
    %c0_3 = arith.constant 0 : index
    %c0_4 = arith.constant 0 : index
    %2 = vector.load %arg4[%c0_3, %c0_4] : memref<128x128xbf16, #tpu.memory_space<vmem>>, vector<128x128xbf16>
    %c0_5 = arith.constant 0 : index
    %c0_6 = arith.constant 0 : index
    %3 = vector.load %arg5[%c0_5, %c0_6] : memref<1x128xf32, #tpu.memory_space<vmem>>, vector<1x128xf32>
    %c0_7 = arith.constant 0 : index
    %c0_8 = arith.constant 0 : index
    %4 = vector.load %arg6[%c0_7, %c0_8] : memref<2x128xf32, #tpu.memory_space<vmem>>, vector<1x128xf32>
    %c1 = arith.constant 1 : index
    %c0_9 = arith.constant 0 : index
    %5 = vector.load %arg6[%c1, %c0_9] : memref<2x128xf32, #tpu.memory_space<vmem>>, vector<1x128xf32>
    %c0_10 = arith.constant 0 : index
    %c0_11 = arith.constant 0 : index
    %6 = vector.load %arg7[%c0_10, %c0_11] : memref<1x128xf32, #tpu.memory_space<vmem>>, vector<1x128xf32>
    %c0_12 = arith.constant 0 : index
    %c0_13 = arith.constant 0 : index
    %7 = vector.load %arg1[%c0_12, %c0_13] : memref<64x6xf32, #tpu.memory_space<vmem>>, vector<64x6xf32>
    %8 = vector.extract_strided_slice %7 {offsets = [0, 0], sizes = [64, 1], strides = [1, 1]} : vector<64x6xf32> to vector<64x1xf32>
    %9 = vector.extract_strided_slice %0 {offsets = [0, 0], sizes = [1, 128], strides = [1, 1]} : vector<6x128xf32> to vector<1x128xf32>
    %10 = vector.broadcast %8 : vector<64x1xf32> to vector<64x128xf32>
    %11 = vector.broadcast %9 : vector<1x128xf32> to vector<64x128xf32>
    %12 = arith.mulf %10, %11 : vector<64x128xf32>
    %13 = vector.extract_strided_slice %7 {offsets = [0, 1], sizes = [64, 1], strides = [1, 1]} : vector<64x6xf32> to vector<64x1xf32>
    %14 = vector.extract_strided_slice %0 {offsets = [1, 0], sizes = [1, 128], strides = [1, 1]} : vector<6x128xf32> to vector<1x128xf32>
    %15 = vector.broadcast %13 : vector<64x1xf32> to vector<64x128xf32>
    %16 = vector.broadcast %14 : vector<1x128xf32> to vector<64x128xf32>
    %17 = arith.mulf %15, %16 : vector<64x128xf32>
    %18 = arith.addf %12, %17 : vector<64x128xf32>
    %19 = vector.extract_strided_slice %7 {offsets = [0, 2], sizes = [64, 1], strides = [1, 1]} : vector<64x6xf32> to vector<64x1xf32>
    %20 = vector.extract_strided_slice %0 {offsets = [2, 0], sizes = [1, 128], strides = [1, 1]} : vector<6x128xf32> to vector<1x128xf32>
    %21 = vector.broadcast %19 : vector<64x1xf32> to vector<64x128xf32>
    %22 = vector.broadcast %20 : vector<1x128xf32> to vector<64x128xf32>
    %23 = arith.mulf %21, %22 : vector<64x128xf32>
    %24 = arith.addf %18, %23 : vector<64x128xf32>
    %25 = vector.extract_strided_slice %7 {offsets = [0, 3], sizes = [64, 1], strides = [1, 1]} : vector<64x6xf32> to vector<64x1xf32>
    %26 = vector.extract_strided_slice %0 {offsets = [3, 0], sizes = [1, 128], strides = [1, 1]} : vector<6x128xf32> to vector<1x128xf32>
    %27 = vector.broadcast %25 : vector<64x1xf32> to vector<64x128xf32>
    %28 = vector.broadcast %26 : vector<1x128xf32> to vector<64x128xf32>
    %29 = arith.mulf %27, %28 : vector<64x128xf32>
    %30 = arith.addf %24, %29 : vector<64x128xf32>
    %31 = vector.extract_strided_slice %7 {offsets = [0, 4], sizes = [64, 1], strides = [1, 1]} : vector<64x6xf32> to vector<64x1xf32>
    %32 = vector.extract_strided_slice %0 {offsets = [4, 0], sizes = [1, 128], strides = [1, 1]} : vector<6x128xf32> to vector<1x128xf32>
    %33 = vector.broadcast %31 : vector<64x1xf32> to vector<64x128xf32>
    %34 = vector.broadcast %32 : vector<1x128xf32> to vector<64x128xf32>
    %35 = arith.mulf %33, %34 : vector<64x128xf32>
    %36 = arith.addf %30, %35 : vector<64x128xf32>
    %37 = vector.extract_strided_slice %7 {offsets = [0, 5], sizes = [64, 1], strides = [1, 1]} : vector<64x6xf32> to vector<64x1xf32>
    %38 = vector.extract_strided_slice %0 {offsets = [5, 0], sizes = [1, 128], strides = [1, 1]} : vector<6x128xf32> to vector<1x128xf32>
    %39 = vector.broadcast %37 : vector<64x1xf32> to vector<64x128xf32>
    %40 = vector.broadcast %38 : vector<1x128xf32> to vector<64x128xf32>
    %41 = arith.mulf %39, %40 : vector<64x128xf32>
    %42 = arith.addf %36, %41 : vector<64x128xf32>
    %43 = vector.broadcast %1 : vector<1x128xf32> to vector<64x128xf32>
    %44 = arith.addf %42, %43 : vector<64x128xf32>
    %cst = arith.constant 0.000000e+00 : f32
    %45 = vector.broadcast %cst : f32 to vector<64x128xf32>
    %46 = arith.maximumf %44, %45 : vector<64x128xf32>
    %47 = arith.truncf %46 : vector<64x128xf32> to vector<64x128xbf16>
    %cst_14 = arith.constant dense<0.000000e+00> : vector<64x128xf32>
    %48 = tpu.matmul %47, %2, %cst_14 {dimension_numbers = #tpu.dot_dimension_numbers<[1], [0], [0], [1], [0, 0, 1, 1], [], []>} : vector<64x128xbf16>, vector<128x128xbf16>, vector<64x128xf32> -> vector<64x128xf32>
    %49 = vector.broadcast %3 : vector<1x128xf32> to vector<64x128xf32>
    %50 = arith.addf %48, %49 : vector<64x128xf32>
    %cst_15 = arith.constant 0.000000e+00 : f32
    %51 = vector.broadcast %cst_15 : f32 to vector<64x128xf32>
    %52 = arith.maximumf %50, %51 : vector<64x128xf32>
    %53 = vector.shape_cast %52 : vector<64x128xf32> to vector<1x64x128xf32>
    %54 = vector.shape_cast %4 : vector<1x128xf32> to vector<1x1x128xf32>
    %55 = vector.broadcast %54 : vector<1x1x128xf32> to vector<1x64x128xf32>
    %56 = arith.mulf %53, %55 : vector<1x64x128xf32>
    %cst_16 = arith.constant dense<0.000000e+00> : vector<1x64xf32>
    %57 = vector.multi_reduction <add>, %56, %cst_16 [2] : vector<1x64x128xf32> to vector<1x64xf32>
    %58 = vector.shape_cast %5 : vector<1x128xf32> to vector<1x1x128xf32>
    %59 = vector.broadcast %58 : vector<1x1x128xf32> to vector<1x64x128xf32>
    %60 = arith.mulf %53, %59 : vector<1x64x128xf32>
    %cst_17 = arith.constant dense<0.000000e+00> : vector<1x64xf32>
    %61 = vector.multi_reduction <add>, %60, %cst_17 [2] : vector<1x64x128xf32> to vector<1x64xf32>
    %62 = tpu.concatenate %57, %61 in 1 : vector<1x64xf32>, vector<1x64xf32> -> vector<1x128xf32>
    %63 = arith.addf %62, %6 : vector<1x128xf32>
    %c0_18 = arith.constant 0 : index
    %c0_19 = arith.constant 0 : index
    %64 = vector.load %arg8[%c0_18, %c0_19] : memref<1x128xf32, #tpu.memory_space<vmem>>, vector<1x128xf32>
    tpu.vector_store %arg8[%c0_18, %c0_19], %63 {strides = array<i32>} : memref<1x128xf32, #tpu.memory_space<vmem>>, vector<1x128xf32>,
    return
  }
  func.func @transform_0(%arg0: i32) -> (i32, i32) {
    %c0_i32 = arith.constant 0 : i32
    %c0_i32_0 = arith.constant 0 : i32
    return %arg0, %c0_i32 : i32, i32
  }
  func.func @transform_1(%arg0: i32) -> (i32, i32) {
    %c0_i32 = arith.constant 0 : i32
    %c0_i32_0 = arith.constant 0 : i32
    %c0_i32_1 = arith.constant 0 : i32
    return %c0_i32, %c0_i32_0 : i32, i32
  }
  func.func @transform_2(%arg0: i32) -> (i32, i32) {
    %c0_i32 = arith.constant 0 : i32
    %c0_i32_0 = arith.constant 0 : i32
    %c0_i32_1 = arith.constant 0 : i32
    return %c0_i32, %c0_i32_0 : i32, i32
  }
  func.func @transform_3(%arg0: i32) -> (i32, i32) {
    %c0_i32 = arith.constant 0 : i32
    %c0_i32_0 = arith.constant 0 : i32
    %c0_i32_1 = arith.constant 0 : i32
    return %c0_i32, %c0_i32_0 : i32, i32
  }
  func.func @transform_4(%arg0: i32) -> (i32, i32) {
    %c0_i32 = arith.constant 0 : i32
    %c0_i32_0 = arith.constant 0 : i32
    %c0_i32_1 = arith.constant 0 : i32
    return %c0_i32, %c0_i32_0 : i32, i32
  }
  func.func @transform_5(%arg0: i32) -> (i32, i32) {
    %c0_i32 = arith.constant 0 : i32
    %c0_i32_0 = arith.constant 0 : i32
    %c0_i32_1 = arith.constant 0 : i32
    return %c0_i32, %c0_i32_0 : i32, i32
  }
  func.func @transform_6(%arg0: i32) -> (i32, i32) {
    %c0_i32 = arith.constant 0 : i32
    %c0_i32_0 = arith.constant 0 : i32
    %c0_i32_1 = arith.constant 0 : i32
    return %c0_i32, %c0_i32_0 : i32, i32
  }
  func.func @transform_7(%arg0: i32) -> (i32, i32) {
    %c0_i32 = arith.constant 0 : i32
    %c0_i32_0 = arith.constant 0 : i32
    return %arg0, %c0_i32 : i32, i32
  }
}

</mosaic_0001>

<bundles_post_ra>
// kernel: tpu_custom_call.1
= control target key start
LH: loop header
LB: loop body
LE: loop exit
PB: predicated region body
PF: predicated region fallthrough
CT: control target
= control target key end

     0   :  { %v851_v1 = vmov 1   ;;  %v852_v2 = vmov 0   ;;  %s1188_s0 = inlined_call_operand.vmem [shape: f32[64,6], index: 0, kind: input, shape index: {}]   ;;  %s1189_s1 = inlined_call_operand.vmem [shape: f32[6,128], index: 1, kind: input, shape index: {}]   ;;  %s1190_s2 = inlined_call_operand.vmem [shape: f32[1,128], index: 2, kind: input, shape index: {}]   ;;  %s1191_s3 = inlined_call_operand.vmem [shape: bf16[128,128], index: 3, kind: input, shape index: {}]   ;;  %s1192_s4 = inlined_call_operand.vmem [shape: f32[1,128], index: 4, kind: input, shape index: {}]   ;;  %s1193_s5 = inlined_call_operand.vmem [shape: f32[2,128], index: 5, kind: input, shape index: {}]   ;;  %s1194_s6 = inlined_call_operand.vmem [shape: f32[1,128], index: 6, kind: input, shape index: {}]   ;;  %s1195_s7 = inlined_call_operand.hbm [shape: f32[1,128], index: 7, kind: output, shape index: {}]  }
   0x1   :  { %v901_v0 = vld [vmem:[%s1188_s0] sm:$0xff]  ;;  %796 = vset.pattern.permute.xlu1 %v851_v1  ;;  %795 = vset.pattern.permute.xlu0 %v852_v2  ;;  %v51_v3 = vld [vmem:[%s1188_s0 + $0x8] sm:$0xff]  ;;  %v52_v4 = vld [vmem:[%s1188_s0 + $0x10] sm:$0xff] }
   0x2   :  { %111 = vperm.xlu1 %796, %v901_v0   ;;  %60 = vperm.xlu0 %795, %v901_v0   ;;  %v914_v5 = vld [vmem:[%s1188_s0 + $0x18] sm:$0xff] }
   0x6   :  { %115 = vperm.xlu1 %796, %v51_v3   ;;  %65 = vperm.xlu0 %795, %v51_v3  }
   0x7   :  { %12 = vsyncpa [#allocation3], 0  ;;  %v920_v6 = vld [vmem:[%s1188_s0 + $0x20] sm:$0xff]  ;;  %v926_v7 = vld [vmem:[%s1188_s0 + $0x30] sm:$0xff]  ;;  %v853_v8 = vmov 2   ;;  %v854_v11 = vmov 3   ;;  %v98_v23 = vlaneseq }
   0x8   :  { %v934_v9 = vld [vmem:[%s1188_s0 + $0x28] sm:$0xff]  ;;  %v940_v10 = vld [vmem:[%s1188_s0 + $0x38] sm:$0xff]  ;;  %v855_v12 = vmov 4   ;;  %v856_v13 = vmov 5   ;;  %v822_v15 = vld [vmem:[%s1191_s3 + $0x30] sm:$0xff]   ;;  %vm598_vm0 = vcmask 130112  }
   0x9   :  { %v821_v14 = vld [vmem:[%s1191_s3 + $0x38] sm:$0xff]   ;;  %v823_v16 = vld [vmem:[%s1191_s3 + $0x28] sm:$0xff]   ;;  %v824_v17 = vld [vmem:[%s1191_s3 + $0x20] sm:$0xff]   ;;  %v1005_v26 = vshrl.u32 %v98_v23, 7  ;;  %vm605_vm1 = vcmask 195712   ;;  %vm612_vm2 = vcmask 261312  }
   0xa   :  { %797 = vset.pattern.permute.xlu1 %v852_v2  ;;  %70 = vperm.xlu0 %795, %v52_v4   ;;  %v825_v18 = vld [vmem:[%s1191_s3 + $0x18] sm:$0xff]   ;;  %v826_v19 = vld [vmem:[%s1191_s3 + $0x10] sm:$0xff]   ;;  %v827_v20 = vld [vmem:[%s1191_s3 + $0x8] sm:$0xff]   ;;  %vm619_vm3 = vcmask 326912   ;;  %vm626_vm4 = vcmask 392512   ;;  %vm661_vm5 = vcmask 654912  }
   0xb   :  { %75 = vperm.xlu1 %797, %v914_v5   ;;  %748 = vmatprep.subr.bf16.mxu0 %v821_v14  ;;  %v828_v21 = vld [vmem:[%s1191_s3] sm:$0xff]   ;;  %v144_v28 = vsub.s32 1, %v1005_v26  ;;  %v100_v29 = vsub.s32 0, %v1005_v26  ;;  %v196_v41 = vsub.s32 2, %v1005_v26  ;;  %vm668_vm6 = vcmask 720512   ;;  %s857_s16 = smov [#allocation2]  }
   0xc   :  { %772 = vmatprep.subr.bf16.mxu1 %v821_v14  ;;  %749 = vmatpush3.bf16.msra.mxu0 %v821_v14  ;;  %v28_v31 = vld [vmem:[%s1189_s1] sm:$0x3f]  ;;  %vm675_vm7 = vcmask 786112   ;;  %vm682_vm8 = vcmask 851712   ;;  %vm689_vm9 = vcmask 917312   ;;  %vm633_vm10 = vcmask 458112  }
   0xd   :  { %780 = vmatpush3.bf16.msra.mxu1 %v821_v14  ;;  %750 = vmatprep.subr.bf16.mxu0 %v822_v15  ;;  %v1014_v32 = vrot.slane %v28_v31, %v144_v28  ;;  %v1016_v33 = vrot.slane %v28_v31, %v100_v29  ;;  %v1025_v44 = vrot.slane %v28_v31, %v196_v41  ;;  %vm696_vm11 = vcmask 982912   ;;  %s716_s0 = sshll.u32 %s857_s16, 4  ;;  %s717_s0 = int_to_ptr.vmem [resolvable:$true] %s716_s0 }
   0xe   :  { %80 = vperm.xlu0 %795, %v920_v6   ;;  %773 = vmatprep.subr.bf16.mxu1 %v822_v15  ;;  %vm640_vm12 = vcmask 523712   ;;  %vm703_vm13 = vcmask 1048512   ;;  %vm706_vm14 = vcmask 523264   ;;  %s829_s17 = scalar_lea.vmem %s717_s0, 16  ;;  %s833_s18 = scalar_lea.vmem %s717_s0, 32 }
   0xf   :  { %798 = vset.pattern.permute.xlu1 %v851_v1  ;;  %p830_p0 = scmp.ne.s32.totalorder %s717_s0, %s829_s17  ;;  %p834_p1 = scmp.lt.s32.totalorder %s717_s0, %s717_s0 }
  0x10   :  { %123 = vperm.xlu1 %798, %v914_v5   ;;  %751 = vmatpush3.bf16.msra.mxu0 %v822_v15  ;;  %p835_p2 = scmp.lt.s32.totalorder %s833_s18, %s829_s17 }
  0x11   :  { %781 = vmatpush3.bf16.msra.mxu1 %v822_v15  ;;  %752 = vmatprep.subr.bf16.mxu0 %v823_v16 }
  0x12   :  { %90 = vperm.xlu0 %795, %v926_v7   ;;  %774 = vmatprep.subr.bf16.mxu1 %v823_v16  ;;  %p836_p3 = por %p835_p2, %p834_p1 }
  0x14   :  { %799 = vset.pattern.permute.xlu1 %v853_v8  ;;  %753 = vmatpush3.bf16.msra.mxu0 %v823_v16  ;;  %p837_p4 = pnand %p836_p3, %p830_p0 }
  0x15   :  { %163 = vperm.xlu1 %799, %v901_v0   ;;  %782 = vmatpush3.bf16.msra.mxu1 %v823_v16 }
  0x16   :  { %803 = vset.pattern.permute.xlu0 %v851_v1  ;;  %754 = vmatprep.subr.bf16.mxu0 %v824_v17 }
  0x17   :  { %119 = vperm.xlu0 %803, %v52_v4   ;;  %775 = vmatprep.subr.bf16.mxu1 %v824_v17 }
  0x18   :  { %755 = vmatpush3.bf16.msra.mxu0 %v824_v17 }
  0x19   :  { %171 = vperm.xlu1 %799, %v52_v4   ;;  %783 = vmatpush3.bf16.msra.mxu1 %v824_v17 }
  0x1a   :  { %756 = vmatprep.subr.bf16.mxu0 %v825_v18  ;;  %776 = vmatprep.subr.bf16.mxu1 %v825_v18 }
  0x1b   :  { %131 = vperm.xlu0 %803, %v934_v9  }
  0x1c   :  { %757 = vmatpush3.bf16.msra.mxu0 %v825_v18 }
  0x1d   :  { %175 = vperm.xlu1 %799, %v914_v5   ;;  %784 = vmatpush3.bf16.msra.mxu1 %v825_v18  ;;  %v352_v18 = vsub.s32 5, %v1005_v26 }
  0x1e   :  { %758 = vmatprep.subr.bf16.mxu0 %v826_v19  ;;  %777 = vmatprep.subr.bf16.mxu1 %v826_v19 }
  0x1f   :  { %139 = vperm.xlu0 %803, %v940_v10  }
  0x20   :  { %759 = vmatpush3.bf16.msra.mxu0 %v826_v19 }
  0x21   :  { %800 = vset.pattern.permute.xlu1 %v852_v2  ;;  %785 = vmatpush3.bf16.msra.mxu1 %v826_v19 }
  0x22   :  { %85 = vperm.xlu1 %800, %v934_v9   ;;  %760 = vmatprep.subr.bf16.mxu0 %v827_v20 }
  0x23   :  { %806 = vset.pattern.permute.xlu0 %v853_v8  ;;  %778 = vmatprep.subr.bf16.mxu1 %v827_v20 }
  0x24   :  { %167 = vperm.xlu0 %806, %v51_v3   ;;  %761 = vmatpush3.bf16.msra.mxu0 %v827_v20 }
  0x25   :  { %786 = vmatpush3.bf16.msra.mxu1 %v827_v20  ;;  %762 = vmatprep.subr.bf16.mxu0 %v828_v21 }
  0x26   :  { %801 = vset.pattern.permute.xlu1 %v851_v1  ;;  %779 = vmatprep.subr.bf16.mxu1 %v828_v21 }
  0x27   :  { %127 = vperm.xlu1 %801, %v920_v6  }
  0x28   :  { %179 = vperm.xlu0 %806, %v920_v6   ;;  %763 = vmatpush3.bf16.msra.mxu0 %v828_v21 }
  0x29   :  { %787 = vmatpush3.bf16.msra.mxu1 %v828_v21 }
  0x2b   :  { %802 = vset.pattern.permute.xlu1 %v854_v11 }
  0x2c   :  { %215 = vperm.xlu1 %802, %v901_v0   ;;  %812 = vset.pattern.permute.xlu0 %v854_v11 }
  0x2d   :  { %231 = vperm.xlu0 %812, %v920_v6  }
  0x30   :  { %219 = vperm.xlu1 %802, %v51_v3  }
  0x31   :  { %813 = vset.pattern.permute.xlu0 %v855_v12 }
  0x32   :  { %271 = vperm.xlu0 %813, %v51_v3  }
  0x34   :  { %804 = vset.pattern.permute.xlu1 %v852_v2 }
  0x35   :  { %95 = vperm.xlu1 %804, %v940_v10  }
  0x36   :  { %275 = vperm.xlu0 %813, %v52_v4  }
  0x39   :  { %805 = vset.pattern.permute.xlu1 %v851_v1 }
  0x3a   :  { %135 = vperm.xlu1 %805, %v926_v7   ;;  %283 = vperm.xlu0 %813, %v920_v6  }
  0x3e   :  { %807 = vset.pattern.permute.xlu1 %v854_v11  ;;  %295 = vperm.xlu0 %813, %v940_v10  }
  0x3f   :  { %223 = vperm.xlu1 %807, %v52_v4  }
  0x42   :  { %819 = vset.pattern.permute.xlu0 %v856_v13 }
  0x43   :  { %227 = vperm.xlu1 %807, %v914_v5   ;;  %323 = vperm.xlu0 %819, %v51_v3  }
  0x47   :  { %808 = vset.pattern.permute.xlu1 %v853_v8  ;;  %327 = vperm.xlu0 %819, %v52_v4  }
  0x48   :  { %183 = vperm.xlu1 %808, %v934_v9  }
  0x4b   :  { %339 = vperm.xlu0 %819, %v934_v9  }
  0x4c   :  { %809 = vset.pattern.permute.xlu1 %v855_v12 }
  0x4d   :  { %267 = vperm.xlu1 %809, %v901_v0  }
  0x51   :  { %810 = vset.pattern.permute.xlu1 %v853_v8 }
  0x52   :  { %187 = vperm.xlu1 %810, %v926_v7  }
  0x56   :  { %191 = vperm.xlu1 %810, %v940_v10  }
  0x5a   :  { %811 = vset.pattern.permute.xlu1 %v855_v12 }
  0x5b   :  { %279 = vperm.xlu1 %811, %v914_v5  }
  0x5f   :  { %814 = vset.pattern.permute.xlu1 %v854_v11 }
  0x60   :  { %235 = vperm.xlu1 %814, %v934_v9  }
  0x64   :  { %815 = vset.pattern.permute.xlu1 %v856_v13 }
  0x65   :  { %319 = vperm.xlu1 %815, %v901_v0  }
  0x69   :  { %816 = vset.pattern.permute.xlu1 %v854_v11 }
  0x6a   :  { %239 = vperm.xlu1 %816, %v926_v7  }
  0x6e   :  { %243 = vperm.xlu1 %816, %v940_v10  }
  0x72   :  { %817 = vset.pattern.permute.xlu1 %v856_v13 }
  0x73   :  { %331 = vperm.xlu1 %817, %v914_v5  }
  0x77   :  { %818 = vset.pattern.permute.xlu1 %v855_v12 }
  0x78   :  { %287 = vperm.xlu1 %818, %v934_v9  }
  0x7c   :  { %291 = vperm.xlu1 %818, %v926_v7  }
  0x7d   :  { %v998_v22 = vpop.permute.xlu1 %111  ;;  %v1000_v24 = vpop.permute.xlu0 %60 }
  0x7e   :  { %v102_v28 = vmul.f32 %v1016_v33, %v1000_v24 }
  0x80   :  { %820 = vset.pattern.permute.xlu1 %v856_v13  ;;  %v300_v13 = vsub.s32 4, %v1005_v26 }
  0x81   :  { %335 = vperm.xlu1 %820, %v920_v6   ;;  %v116_v25 = vpop.permute.xlu1 %115  ;;  %v66_v27 = vpop.permute.xlu0 %65 }
  0x82   :  { %v147_v11 = vmul.f32 %v1014_v32, %v116_v25  ;;  %v103_v12 = vmul.f32 %v1016_v33, %v66_v27  ;;  %v1069_v21 = vrot.slane %v28_v31, %v300_v13  ;;  %v146_v27 = vmul.f32 %v1014_v32, %v998_v22 }
  0x84   :  { %v155_v19 = vadd.f32 %v147_v11, %v103_v12 }
  0x85   :  { %343 = vperm.xlu1 %820, %v926_v7   ;;  %v1018_v34 = vpop.permute.xlu0 %70 }
  0x86   :  { %v76_v30 = vpop.permute.xlu1 %75  ;;  %v104_v22 = vmul.f32 %v1016_v33, %v1018_v34 }
  0x87   :  { %v105_v36 = vmul.f32 %v1016_v33, %v76_v30  ;;  %v1075_v30 = vrot.slane %v28_v31, %v352_v18 }
  0x89   :  { %347 = vperm.xlu1 %820, %v940_v10   ;;  %v81_v39 = vpop.permute.xlu0 %80  ;;  %v248_v10 = vsub.s32 3, %v1005_v26 }
  0x8a   :  { %v106_v50 = vmul.f32 %v1016_v33, %v81_v39  ;;  %v154_v39 = vadd.f32 %v146_v27, %v102_v28 }
  0x8b   :  { %v124_v35 = vpop.permute.xlu1 %123  ;;  %v1065_v17 = vrot.slane %v28_v31, %v248_v10 }
  0x8c   :  { %v149_v37 = vmul.f32 %v1014_v32, %v124_v35 }
  0x8d   :  { %v91_v43 = vpop.permute.xlu0 %90 }
  0x8e   :  { %v157_v38 = vadd.f32 %v149_v37, %v105_v36  ;;  %v108_v60 = vmul.f32 %v1016_v33, %v91_v43 }
  0x90   :  { %v164_v40 = vpop.permute.xlu1 %163 }
  0x91   :  { %v198_v36 = vmul.f32 %v1025_v44, %v164_v40 }
  0x92   :  { %v120_v48 = vpop.permute.xlu0 %119 }
  0x93   :  { %v148_v24 = vmul.f32 %v1014_v32, %v120_v48 }
  0x94   :  { %v1023_v42 = vpop.permute.xlu1 %171 }
  0x96   :  { %v1033_v51 = vpop.permute.xlu0 %131 }
  0x98   :  { %v176_v45 = vpop.permute.xlu1 %175 }
  0x99   :  { %v201_v46 = vmul.f32 %v1025_v44, %v176_v45 }
  0x9a   :  { %v1038_v56 = vpop.permute.xlu0 %139 }
  0x9b   :  { %v1028_v47 = vadd.f32 %v201_v46, %v157_v38  ;;  %v206_v46 = vadd.f32 %v198_v36, %v154_v39 }
  0x9d   :  { %v1030_v49 = vpop.permute.xlu1 %85 }
  0x9f   :  { %v168_v58 = vpop.permute.xlu0 %167 }
  0xa0   :  { %v199_v16 = vmul.f32 %v1025_v44, %v168_v58  ;;  %v200_v58 = vmul.f32 %v1025_v44, %v1023_v42 }
  0xa2   :  { %v128_v52 = vpop.permute.xlu1 %127  ;;  %v207_v29 = vadd.f32 %v199_v16, %v155_v19 }
  0xa3   :  { %v150_v53 = vmul.f32 %v1014_v32, %v128_v52  ;;  %v1043_v61 = vpop.permute.xlu0 %179 }
  0xa5   :  { %v1036_v54 = vadd.f32 %v150_v53, %v106_v50  ;;  %v1088_v53 = vld [vmem:[%s1190_s2] ss:$0 sm:$0xff] }
  0xa7   :  { %v216_v55 = vpop.permute.xlu1 %215 }
  0xa8   :  { %v1048_v1 = vpop.permute.xlu0 %231  ;;  %v250_v41 = vmul.f32 %v1065_v17, %v216_v55 }
  0xaa   :  { %v258_v52 = vadd.f32 %v250_v41, %v206_v46 }
  0xab   :  { %v220_v57 = vpop.permute.xlu1 %219 }
  0xac   :  { %v251_v20 = vmul.f32 %v1065_v17, %v220_v57  ;;  %v156_v57 = vadd.f32 %v148_v24, %v104_v22 }
  0xad   :  { %v272_v4 = vpop.permute.xlu0 %271 }
  0xae   :  { %v259_v37 = vadd.f32 %v251_v20, %v207_v29  ;;  %v303_v38 = vmul.f32 %v1069_v21, %v272_v4  ;;  %v208_v4 = vadd.f32 %v200_v58, %v156_v57  ;;  %v151_v29 = vmul.f32 %v1014_v32, %v1033_v51 }
  0xb0   :  { %v1040_v59 = vpop.permute.xlu1 %95  ;;  %v311_v31 = vadd.f32 %v303_v38, %v259_v37 }
  0xb1   :  { %v276_v6 = vpop.permute.xlu0 %275 }
  0xb2   :  { %v304_v12 = vmul.f32 %v1069_v21, %v276_v6 }
  0xb5   :  { %v136_v62 = vpop.permute.xlu1 %135  ;;  %v1052_v8 = vpop.permute.xlu0 %283 }
  0xb6   :  { %v152_v63 = vmul.f32 %v1014_v32, %v136_v62 }
  0xb8   :  { %v1046_v0 = vadd.f32 %v152_v63, %v108_v60 }
  0xb9   :  { %v1062_v15 = vpop.permute.xlu0 %295 }
  0xba   :  { %v224_v2 = vpop.permute.xlu1 %223 }
  0xbb   :  { %v252_v48 = vmul.f32 %v1065_v17, %v224_v2 }
  0xbd   :  { %v260_v13 = vadd.f32 %v252_v48, %v208_v4  ;;  %v306_v48 = vmul.f32 %v1069_v21, %v1052_v8 }
  0xbe   :  { %v228_v3 = vpop.permute.xlu1 %227  ;;  %v324_v35 = vpop.permute.xlu0 %323 }
  0xbf   :  { %v355_v43 = vmul.f32 %v1075_v30, %v324_v35  ;;  %v253_v42 = vmul.f32 %v1065_v17, %v228_v3  ;;  %v312_v2 = vadd.f32 %v304_v12, %v260_v13  ;;  %v107_v35 = vmul.f32 %v1016_v33, %v1030_v49 }
  0xc1   :  { %v363_v40 = vadd.f32 %v355_v43, %v311_v31  ;;  %v261_v6 = vadd.f32 %v253_v42, %v1028_v47  ;;  %v159_v41 = vadd.f32 %v151_v29, %v107_v35  ;;  %v202_v47 = vmul.f32 %v1025_v44, %v1043_v61 }
  0xc2   :  { %v328_v11 = vpop.permute.xlu0 %327  ;;  %v109_v61 = vmul.f32 %v1016_v33, %v1040_v59 }
  0xc3   :  { %v1050_v5 = vpop.permute.xlu1 %183  ;;  %v377_v63 = vadd.f32 %v1088_v53, %v363_v40  ;;  %v356_v19 = vmul.f32 %v1075_v30, %v328_v11  ;;  %v254_v40 = vmul.f32 %v1065_v17, %v1048_v1 }
  0xc4   :  { %v203_v3 = vmul.f32 %v1025_v44, %v1050_v5 }
  0xc5   :  { %v385_v18 = vmax.f32 %v377_v63, 0.0  ;;  %v364_v36 = vadd.f32 %v356_v19, %v312_v2 }
  0xc6   :  { %v211_v51 = vadd.f32 %v203_v3, %v159_v41  ;;  %v340_v31 = vpop.permute.xlu0 %339  ;;  %v725_v3 = vld [vmem:[%s1192_s4] ss:$0 sm:$0xff] }
  0xc7   :  { %v734_v41 = vld [vmem:[%s1193_s5] ss:$0 sm:$0xff] }
  0xc8   :  { %v268_v7 = vpop.permute.xlu1 %267 }
  0xc9   :  { %v302_v50 = vmul.f32 %v1069_v21, %v268_v7 }
  0xcb   :  { %v310_v60 = vadd.f32 %v302_v50, %v258_v52 }
  0xcd   :  { %v1054_v9 = vpop.permute.xlu1 %187 }
  0xd1   :  { %v1060_v14 = vpop.permute.xlu1 %191 }
  0xd2   :  { %v205_v63 = vmul.f32 %v1025_v44, %v1060_v14 }
  0xd6   :  { %v280_v25 = vpop.permute.xlu1 %279 }
  0xd7   :  { %v305_v28 = vmul.f32 %v1069_v21, %v280_v25  ;;  %v378_v25 = vadd.f32 %v1088_v53, %v364_v36 }
  0xd9   :  { %v313_v38 = vadd.f32 %v305_v28, %v261_v6  ;;  %v386_v5 = vmax.f32 %v378_v25, 0.0 }
  0xdb   :  { %v236_v45 = vpop.permute.xlu1 %235 }
  0xdc   :  { %v255_v43 = vmul.f32 %v1065_v17, %v236_v45  ;;  %v359_v45 = vmul.f32 %v1075_v30, %v340_v31 }
  0xde   :  { %v263_v50 = vadd.f32 %v255_v43, %v211_v51 }
  0xe0   :  { %v320_v55 = vpop.permute.xlu1 %319 }
  0xe1   :  { %v354_v34 = vmul.f32 %v1075_v30, %v320_v55 }
  0xe3   :  { %v362_v62 = vadd.f32 %v354_v34, %v310_v60  ;;  %v153_v60 = vmul.f32 %v1014_v32, %v1038_v56  ;;  %v210_v34 = vadd.f32 %v202_v47, %v1036_v54 }
  0xe5   :  { %v240_v7 = vpop.permute.xlu1 %239  ;;  %v376_v10 = vadd.f32 %v1088_v53, %v362_v62  ;;  %v204_v62 = vmul.f32 %v1025_v44, %v1054_v9  ;;  %v262_v1 = vadd.f32 %v254_v40, %v210_v34  ;;  %v161_v32 = vadd.f32 %v153_v60, %v109_v61 }
  0xe6   :  { %v256_v4 = vmul.f32 %v1065_v17, %v240_v7  ;;  %v309_v44 = vmul.f32 %v1069_v21, %v1062_v15 }
  0xe7   :  { %v384_v16 = vmax.f32 %v376_v10, 0.0  ;;  %v314_v56 = vadd.f32 %v306_v48, %v262_v1  ;;  %v212_v11 = vadd.f32 %v204_v62, %v1046_v0  ;;  %v213_v9 = vadd.f32 %v205_v63, %v161_v32 }
  0xe9   :  { %v244_v20 = vpop.permute.xlu1 %243  ;;  %v392_v27 = vpack.c.bf16 %v385_v18, %v384_v16  ;;  %v264_v12 = vadd.f32 %v256_v4, %v212_v11 }
  0xea   :  { %v257_v33 = vmul.f32 %v1065_v17, %v244_v20 }
  0xeb   :  { %764 = vmatprep.mubr.bf16.mxu0 %v392_v27 }
  0xec   :  { %v265_v7 = vadd.f32 %v257_v33, %v213_v9 }
  0xee   :  { %v332_v37 = vpop.permute.xlu1 %331  ;;  %v317_v2 = vadd.f32 %v309_v44, %v265_v7 }
  0xef   :  { %v357_v39 = vmul.f32 %v1075_v30, %v332_v37 }
  0xf1   :  { %v365_v22 = vadd.f32 %v357_v39, %v313_v38 }
  0xf3   :  { %v379_v46 = vadd.f32 %v1088_v53, %v365_v22  ;;  %v288_v49 = vpop.permute.xlu1 %287 }
  0xf4   :  { %v307_v24 = vmul.f32 %v1069_v21, %v288_v49 }
  0xf5   :  { %v387_v52 = vmax.f32 %v379_v46, 0.0 }
  0xf6   :  { %v315_v55 = vadd.f32 %v307_v24, %v263_v50 }
  0xf7   :  { %v292_v57 = vpop.permute.xlu1 %291  ;;  %v393_v58 = vpack.c.bf16 %v387_v52, %v386_v5 }
  0xf8   :  { %v367_v10 = vadd.f32 %v359_v45, %v315_v55  ;;  %v308_v59 = vmul.f32 %v1069_v21, %v292_v57 }
  0xf9   :  { %765 = vmatmul.mubr.bf16.vlgmr.msra.gmra.mxu0 %v393_v58 }
  0xfa   :  { %v381_v16 = vadd.f32 %v1088_v53, %v367_v10  ;;  %v316_v18 = vadd.f32 %v308_v59, %v264_v12 }
  0xfc   :  { %v336_v54 = vpop.permute.xlu1 %335  ;;  %v389_v20 = vmax.f32 %v381_v16, 0.0 }
  0xfd   :  { %v358_v8 = vmul.f32 %v1075_v30, %v336_v54 }
  0xff   :  { %v366_v13 = vadd.f32 %v358_v8, %v314_v56 }
 0x100   :  { %v344_v14 = vpop.permute.xlu1 %343 }
 0x101   :  { %v360_v42 = vmul.f32 %v1075_v30, %v344_v14  ;;  %v380_v0 = vadd.f32 %v1088_v53, %v366_v13 }
 0x103   :  { %v368_v17 = vadd.f32 %v360_v42, %v316_v18  ;;  %v388_v19 = vmax.f32 %v380_v0, 0.0  ;;  %v588_v42 = vand.u32 127, %v98_v23 }
 0x104   :  { %v348_v27 = vpop.permute.xlu1 %347 }
 0x105   :  { %v361_v28 = vmul.f32 %v1075_v30, %v348_v27  ;;  %v394_v29 = vpack.c.bf16 %v389_v20, %v388_v19  ;;  %v382_v35 = vadd.f32 %v1088_v53, %v368_v17  ;;  %v735_v30 = vld [vmem:[%s1193_s5 + $0x1] ss:$0 sm:$0xff]  ;;  %v593_v19 = vadd.s32 4294967288, %v588_v42 }
 0x106   :  { %v600_v20 = vadd.s32 4294967280, %v588_v42 }
 0x107   :  { %v369_v6 = vadd.f32 %v361_v28, %v317_v2  ;;  %768 = vmatprep.mubr.bf16.mxu1 %v394_v29  ;;  %v390_v21 = vmax.f32 %v382_v35, 0.0  ;;  %v591_v28 = vsub.s32 %v588_v42, %v1005_v26  ;;  %v596_v29 = vsub.s32 %v593_v19, %v1005_v26 }
 0x108   :  { %v607_v35 = vadd.s32 4294967272, %v588_v42 }
 0x109   :  { %v383_v15 = vadd.f32 %v1088_v53, %v369_v6  ;;  %v663_v6 = vadd.s32 4294967216, %v588_v42 }
 0x10b   :  { %v391_v36 = vmax.f32 %v383_v15, 0.0  ;;  %v603_v15 = vsub.s32 %v600_v20, %v1005_v26 }
 0x10d   :  { %v395_v37 = vpack.c.bf16 %v391_v36, %v390_v21  ;;  %v1158_v21 = vadd.s32 4294967184, %v588_v42  ;;  %v1160_v36 = vadd.s32 4294967248, %v588_v42 }
 0x10f   :  { %769 = vmatmul.mubr.bf16.vlgmr.msra.gmra.mxu1 %v395_v37  ;;  %v614_v37 = vadd.s32 4294967264, %v588_v42 }
 0x1b9   :  { %v766_v38 = vpop.f32.mrf.mxu0 }
 0x1ba   :  { %v493_v39 = vadd.f32 %v766_v38, %v725_v3 }
 0x1bb   :  { %v484_v22 = vpop.f32.mrf.mxu0 }
 0x1bc   :  { %v517_v25 = vmax.f32 %v493_v39, 0.0  ;;  %v485_v51 = vadd.f32 %v725_v3, %v484_v22  ;;  %v651_v39 = vadd.s32 4294967232, %v588_v42  ;;  %v621_v22 = vadd.s32 4294967256, %v588_v42 }
 0x1bd   :  { %v767_v47 = vpop.f32.mrf.mxu0 }
 0x1be   :  { %v557_v53 = vmul.f32 %v735_v30, %v517_v25  ;;  %v529_v43 = vmul.f32 %v734_v41, %v517_v25  ;;  %v515_v50 = vmax.f32 %v485_v51, 0.0  ;;  %v496_v52 = vadd.f32 %v767_v47, %v725_v3 }
 0x1bf   :  { %v487_v57 = vpop.f32.mrf.mxu0  ;;  %v610_v25 = vsub.s32 %v607_v35, %v1005_v26  ;;  %v670_v51 = vadd.s32 4294967208, %v588_v42  ;;  %v694_v47 = vsub.s32 %v1158_v21, %v1005_v26 }
 0x1c0   :  { %567 = vadd.xlane.f32.xlu0 %v557_v53  ;;  %539 = vadd.xlane.f32.xlu1 %v529_v43  ;;  %v518_v60 = vmax.f32 %v496_v52, 0.0  ;;  %v488_v34 = vadd.f32 %v725_v3, %v487_v57  ;;  %v527_v48 = vmul.f32 %v734_v41, %v515_v50  ;;  %v555_v10 = vmul.f32 %v735_v30, %v515_v50 }
 0x1c1   :  { %v677_v53 = vadd.s32 4294967200, %v588_v42  ;;  %v617_v50 = vsub.s32 %v614_v37, %v1005_v26  ;;  %v654_v52 = vsub.s32 %v651_v39, %v1005_v26 }
 0x1c2   :  { %v516_v1 = vmax.f32 %v488_v34, 0.0  ;;  %v530_v4 = vmul.f32 %v734_v41, %v518_v60  ;;  %v558_v8 = vmul.f32 %v735_v30, %v518_v60  ;;  %v624_v34 = vsub.s32 %v621_v22, %v1005_v26 }
 0x1c4   :  { %v528_v54 = vmul.f32 %v734_v41, %v516_v1  ;;  %v556_v12 = vmul.f32 %v735_v30, %v516_v1 }
 0x1cf   :  { %v770_v46 = vpop.f32.mrf.mxu1 }
 0x1d0   :  { %v509_v49 = vadd.f32 %v770_v46, %v725_v3  ;;  %v666_v46 = vsub.s32 %v663_v6, %v1005_v26 }
 0x1d1   :  { %v500_v24 = vpop.f32.mrf.mxu1 }
 0x1d2   :  { %v521_v31 = vmax.f32 %v509_v49, 0.0  ;;  %v501_v5 = vadd.f32 %v725_v3, %v500_v24 }
 0x1d3   :  { %v771_v58 = vpop.f32.mrf.mxu1 }
 0x1d4   :  { %v519_v40 = vmax.f32 %v501_v5, 0.0  ;;  %v561_v55 = vmul.f32 %v735_v30, %v521_v31  ;;  %v533_v45 = vmul.f32 %v734_v41, %v521_v31  ;;  %v512_v32 = vadd.f32 %v771_v58, %v725_v3 }
 0x1d5   :  { %v503_v62 = vpop.f32.mrf.mxu1  ;;  %v684_v31 = vadd.s32 4294967192, %v588_v42  ;;  %v631_v5 = vsub.s32 %v1160_v36, %v1005_v26  ;;  %v635_v58 = vadd.s32 4294967240, %v588_v42 }
 0x1d6   :  { %575 = vadd.xlane.f32.xlu0 %v561_v55  ;;  %547 = vadd.xlane.f32.xlu1 %v533_v45  ;;  %v531_v61 = vmul.f32 %v734_v41, %v519_v40  ;;  %v504_v63 = vadd.f32 %v725_v3, %v503_v62  ;;  %v559_v11 = vmul.f32 %v735_v30, %v519_v40  ;;  %v522_v33 = vmax.f32 %v512_v32, 0.0 }
 0x1d7   :  { %v680_v45 = vsub.s32 %v677_v53, %v1005_v26  ;;  %v687_v62 = vsub.s32 %v684_v31, %v1005_v26 }
 0x1d8   :  { %v520_v56 = vmax.f32 %v504_v63, 0.0  ;;  %v534_v9 = vmul.f32 %v734_v41, %v522_v33  ;;  %v562_v16 = vmul.f32 %v735_v30, %v522_v33 }
 0x1da   :  { %543 = vadd.xlane.f32.xlu1 %v531_v61  ;;  %535 = vadd.xlane.f32.xlu0 %v527_v48  ;;  %v532_v59 = vmul.f32 %v734_v41, %v520_v56  ;;  %v560_v13 = vmul.f32 %v735_v30, %v520_v56  ;;  %v656_v41 = vadd.s32 4294967224, %v588_v42  ;;  %v673_v61 = vsub.s32 %v670_v51, %v1005_v26 }
 0x1dc   :  { %v659_v40 = vsub.s32 %v656_v41, %v1005_v26 }
 0x1de   :  { %541 = vadd.xlane.f32.xlu1 %v530_v4  ;;  %563 = vadd.xlane.f32.xlu0 %v555_v10  ;;  %v698_v10 = vadd.s32 4294967176, %v588_v42 }
 0x1e2   :  { %537 = vadd.xlane.f32.xlu1 %v528_v54  ;;  %571 = vadd.xlane.f32.xlu0 %v559_v11  ;;  %v638_v54 = vsub.s32 %v635_v58, %v1005_v26 }
 0x1e6   :  { %545 = vadd.xlane.f32.xlu1 %v532_v59  ;;  %569 = vadd.xlane.f32.xlu0 %v558_v8 }
 0x1ea   :  { %549 = vadd.xlane.f32.xlu1 %v534_v9  ;;  %565 = vadd.xlane.f32.xlu0 %v556_v12 }
 0x1ee   :  { %573 = vadd.xlane.f32.xlu0 %v560_v13 }
 0x1f2   :  { %577 = vadd.xlane.f32.xlu0 %v562_v16 }
 0x249   :  { %v568_v44 = vpop.xlane.xlu0 %567  ;;  %v540_v14 = vpop.xlane.xlu1 %539 }
 0x24a   :  { %v604_v49 = vrot.slane %v540_v14, %v603_v15  ;;  %v667_v32 = vrot.slane %v568_v44, %v666_v46  ;;  %v701_v44 = vsub.s32 %v698_v10, %v1005_v26  ;;  %v49_v26 = vld [vmem:[%s1194_s6] sm:$0x1] }
 0x25f   :  { %v1150_v7 = vpop.xlane.xlu0 %575  ;;  %v1152_v18 = vpop.xlane.xlu1 %547 }
 0x263   :  { %v544_v0 = vpop.xlane.xlu1 %543  ;;  %v536_v17 = vpop.xlane.xlu0 %535 }
 0x264   :  { %v592_v38 = vrot.slane %v536_v17, %v591_v28  ;;  %v618_v56 = vrot.slane %v544_v0, %v617_v50 }
 0x267   :  { %v542_v27 = vpop.xlane.xlu1 %541  ;;  %v564_v2 = vpop.xlane.xlu0 %563 }
 0x268   :  { %v611_v60 = vrot.slane %v542_v27, %v610_v25  ;;  %v655_v1 = vrot.slane %v564_v2, %v654_v52  ;;  %v695_v27 = vrot.slane %v1150_v7, %v694_v47  ;;  %v632_v2 = vrot.slane %v1152_v18, %v631_v5 }
 0x26b   :  { %v538_v23 = vpop.xlane.xlu1 %537  ;;  %v572_v3 = vpop.xlane.xlu0 %571 }
 0x26c   :  { %v597_v30 = vrot.slane %v538_v23, %v596_v29  ;;  %v681_v8 = vrot.slane %v572_v3, %v680_v45 }
 0x26e   :  { %v599_v43 = vsel %vm598_vm0, %v597_v30, %v592_v38 }
 0x26f   :  { %v570_v24 = vpop.xlane.xlu0 %569  ;;  %v606_v55 = vsel %vm605_vm1, %v604_v49, %v599_v43  ;;  %v546_v57 = vpop.xlane.xlu1 %545 }
 0x270   :  { %v613_v63 = vsel %vm612_vm2, %v611_v60, %v606_v55  ;;  %v625_v11 = vrot.slane %v546_v57, %v624_v34  ;;  %v674_v33 = vrot.slane %v570_v24, %v673_v61 }
 0x271   :  { %v620_v9 = vsel %vm619_vm3, %v618_v56, %v613_v63 }
 0x272   :  { %v627_v0 = vsel %vm626_vm4, %v625_v11, %v620_v9 }
 0x273   :  { %v566_v48 = vpop.xlane.xlu0 %565  ;;  %v550_v12 = vpop.xlane.xlu1 %549  ;;  %v634_v35 = vsel %vm633_vm10, %v632_v2, %v627_v0 }
 0x274   :  { %v660_v4 = vrot.slane %v566_v48, %v659_v40  ;;  %v639_v19 = vrot.slane %v550_v12, %v638_v54 }
 0x276   :  { %v662_v59 = vsel %vm661_vm5, %v660_v4, %v655_v1  ;;  %v641_v15 = vsel %vm640_vm12, %v639_v19, %v634_v35 }
 0x277   :  { %v669_v13 = vsel %vm668_vm6, %v667_v32, %v662_v59  ;;  %v574_v16 = vpop.xlane.xlu0 %573 }
 0x278   :  { %v676_v14 = vsel %vm675_vm7, %v674_v33, %v669_v13  ;;  %v688_v17 = vrot.slane %v574_v16, %v687_v62 }
 0x279   :  { %v683_v42 = vsel %vm682_vm8, %v681_v8, %v676_v14 }
 0x27a   :  { %v690_v20 = vsel %vm689_vm9, %v688_v17, %v683_v42 }
 0x27b   :  { %v578_v28 = vpop.xlane.xlu0 %577  ;;  %v697_v6 = vsel %vm696_vm11, %v695_v27, %v690_v20 }
 0x27c   :  { %v702_v29 = vrot.slane %v578_v28, %v701_v44 }
 0x27e   :  { %v704_v21 = vsel %vm703_vm13, %v702_v29, %v697_v6 }
 0x27f   :  { %v707_v36 = vsel %vm706_vm14, %v641_v15, %v704_v21 }
 0x280   :  { %v708_v37 = vadd.f32 %v707_v36, %v49_v26 }
 0x282   :  { %709 = vst [vmem:[#allocation2] sm:$0x1] %v708_v37 }
 0x283   :  { %840 = shalt.err (!%p837_p4)
}
 0x284   :  { %719 = dma.vmem_to_hbm [thread:$0]  %s717_s0, 16, %s1195_s7, [#allocation3]  }
 0x285   :  { %849 = dma.done.wait [#allocation3], 16  }
 0x286   :  { %850 = vsyncadd [#allocation3], 4294967280 }
 0x287   :  { %723 = vsyncpa [#allocation3], 1 }

</bundles_post_ra>
